<compile_context>
chip_gen: v5e
topology: v5e:2x2
jax: 0.10.0
libtpu: 0.0.40
codegen_flags: <defaults>
</compile_context>

<pallas_src>
import functools

import jax
import jax.numpy as jnp
from jax.experimental import pallas as pl
from jax.experimental.pallas import tpu as pltpu


# ----------------------------- Pallas kernel ------------------------------ #
def _conv_matmul_relu_kernel(p_ref, w_ref, b_ref, o_ref, acc_ref):
    """One (M-tile, OC-tile, K-tile) step of out = relu(patches @ W + bias).

    p_ref:   (tm, tk)     bf16   patch tile
    w_ref:   (tk, t_oc)   bf16   weight tile
    b_ref:   (1, t_oc)    f32    bias tile
    o_ref:   (tm, t_oc)   f32    output tile (resident across K axis)
    acc_ref: (tm, t_oc)   f32    VMEM accumulator scratch
    """
    k = pl.program_id(2)

    @pl.when(k == 0)
    def _():
        acc_ref[...] = jnp.zeros_like(acc_ref)

    acc_ref[...] += jnp.dot(p_ref[...], w_ref[...],
                            preferred_element_type=jnp.float32)

    @pl.when(k == pl.num_programs(2) - 1)
    def _():
        o_ref[...] = jnp.maximum(acc_ref[...] + b_ref[...], 0.0).astype(
            o_ref.dtype)


# ------------------------------- helpers ----------------------------------- #
def _round_up(x, m):
    return ((x + m - 1) // m) * m


def _im2col_nhwc(x_nhwc, kh, kw, sh, sw):
    """x_nhwc: spatially pre-padded (N, Hp, Wp, C) ->
    patches (N*OH*OW, KH*KW*C) with the K axis ordered (KH, KW, C)."""
    n, hp, wp, c = x_nhwc.shape
    oh = (hp - kh) // sh + 1
    ow = (wp - kw) // sw + 1
    taps = []
    for i in range(kh):
        for j in range(kw):
            taps.append(
                x_nhwc[:, i:i + sh * (oh - 1) + 1:sh,
                       j:j + sw * (ow - 1) + 1:sw, :])     # (N, OH, OW, C)
    patches = jnp.concatenate(taps, axis=-1)               # (N, OH, OW, KH*KW*C)
    return patches.reshape(n * oh * ow, kh * kw * c), oh, ow


def _pick_tiles(m, k, oc_pad, *, budget=24 << 20):
    """Choose (tm, m_pad, tk, k_pad, t_oc) under a conservative VMEM budget."""
    # OC tile: 256 to match the 256-wide MXU on v6e/v7x when it divides.
    t_oc = 256 if oc_pad % 256 == 0 else 128

    # K: single full block (no padding, no extra HBM copy) unless very deep.
    if k <= 4096:
        tk, k_pad = k, k
    else:
        tk = 512
        k_pad = _round_up(k, tk)

    def fits(tm):
        tile_bytes = (2 * tm * tk * 2          # double-buffered bf16 patches
                      + 2 * tk * t_oc * 2      # double-buffered bf16 weights
                      + 2 * tm * t_oc * 4      # double-buffered f32 output
                      + tm * t_oc * 4          # f32 accumulator scratch
                      + 2 * t_oc * 4)          # bias
        return tile_bytes <= budget

    candidates = (1024, 512, 256, 128, 64, 32, 16, 8)
    for tm in candidates:                      # prefer exact divisors of M
        if tm <= m and m % tm == 0 and fits(tm):
            return tm, m, tk, k_pad, t_oc
    m8 = max(8, _round_up(m, 8))
    for tm in candidates:                      # fall back to padded M
        if tm <= m8 and fits(tm):
            return tm, _round_up(m, tm), tk, k_pad, t_oc
    return 8, _round_up(m, 8), tk, k_pad, t_oc


# --------------------------------- wrapper --------------------------------- #
@functools.partial(jax.jit, static_argnames=("stride", "padding"))
def conv_relu(x, weight, bias, *, stride, padding):
    """Forward of ConvReLU.

    x:      (N, C, H, W)      float32  (NCHW, PyTorch convention)
    weight: (OC, C, KH, KW)   float32  (OIHW)
    bias:   (OC,)             float32
    returns (N, OC, OH, OW)   float32
    """
    n, c, h, w = x.shape
    oc, _, kh, kw = weight.shape
    sh = sw = int(stride)
    ph = pw = int(padding)

    # NCHW -> NHWC (channels on the lane axis), spatial zero-pad, bf16 cast
    # *before* im2col so the inflated patch matrix is half the bytes.
    x_nhwc = jnp.pad(x.transpose(0, 2, 3, 1).astype(jnp.bfloat16),
                     ((0, 0), (ph, ph), (pw, pw), (0, 0)))
    patches, oh, ow = _im2col_nhwc(x_nhwc, kh, kw, sh, sw)   # (M, K) bf16
    m, k = patches.shape

    oc_pad = _round_up(oc, 128)
    tm, m_pad, tk, k_pad, t_oc = _pick_tiles(m, k, oc_pad)

    if (m_pad, k_pad) != (m, k):                             # single fused pad
        patches = jnp.pad(patches, ((0, m_pad - m), (0, k_pad - k)))

    # (OC, C, KH, KW) -> (KH, KW, C, OC) -> (K, OC): matches patch K ordering.
    w_mat = weight.transpose(2, 3, 1, 0).reshape(k, oc).astype(jnp.bfloat16)
    if (k_pad, oc_pad) != (k, oc):
        w_mat = jnp.pad(w_mat, ((0, k_pad - k), (0, oc_pad - oc)))
    b_mat = jnp.pad(bias.astype(jnp.float32),
                    (0, oc_pad - oc)).reshape(1, oc_pad)

    grid = (m_pad // tm, oc_pad // t_oc, k_pad // tk)

    cost = pl.CostEstimate(
        flops=2 * m_pad * k_pad * oc_pad,
        transcendentals=0,
        bytes_accessed=(m_pad * k_pad * 2 + k_pad * oc_pad * 2
                        + oc_pad * 4 + m_pad * oc_pad * 4),
    )

    out = pl.pallas_call(
        _conv_matmul_relu_kernel,
        out_shape=jax.ShapeDtypeStruct((m_pad, oc_pad), jnp.float32),
        grid_spec=pltpu.PrefetchScalarGridSpec(
            num_scalar_prefetch=0,
            grid=grid,
            in_specs=[
                pl.BlockSpec((tm, tk), lambda i, j, kk: (i, kk)),    # patches
                pl.BlockSpec((tk, t_oc), lambda i, j, kk: (kk, j)),  # weights
                pl.BlockSpec((1, t_oc), lambda i, j, kk: (0, j)),    # bias
            ],
            out_specs=pl.BlockSpec((tm, t_oc), lambda i, j, kk: (i, j)),
            scratch_shapes=[pltpu.VMEM((tm, t_oc), jnp.float32)],
        ),
        compiler_params=pltpu.CompilerParams(
            dimension_semantics=("parallel", "parallel", "arbitrary"),
            vmem_limit_bytes=32 * 1024 * 1024,
        ),
        cost_estimate=cost,
    )(patches, w_mat, b_mat)

    # Drop M/OC padding, back to NCHW (PyTorch convention).
    # TODO(synk): keep the model NHWC end-to-end to drop this final transpose.
    return out[:m, :oc].reshape(n, oh, ow, oc).transpose(0, 3, 1, 2)


# --------------------------------- demo ----------------------------------- #
if __name__ == "__main__":
    # Module config: ConvReLU(in_size, out_size, kernel_size, stride, padding)
    IN_C, OUT_C, KSIZE, STRIDE, PAD = 4, 8, 3, 1, 1
    N, H, W = 2, 16, 16

    key = jax.random.PRNGKey(0)
    kx, kw_, kb = jax.random.split(key, 3)

    x = jax.random.normal(kx, (N, IN_C, H, W), dtype=jnp.float32)
    # Deterministic PyTorch-style uniform init with bound 1/sqrt(fan_in).
    fan_in = IN_C * KSIZE * KSIZE
    bound = 1.0 / (fan_in ** 0.5)
    weight = jax.random.uniform(kw_, (OUT_C, IN_C, KSIZE, KSIZE),
                                minval=-bound, maxval=bound, dtype=jnp.float32)
    bias = jax.random.uniform(kb, (OUT_C,), minval=-bound, maxval=bound,
                              dtype=jnp.float32)

    y = conv_relu(x, weight, bias, stride=STRIDE, padding=PAD)
    y = jax.block_until_ready(y)

    # Sanity check against XLA's conv (bf16 operands -> loosened tolerance).
    ref = jax.lax.conv_general_dilated(
        x, weight, window_strides=(STRIDE, STRIDE),
        padding=((PAD, PAD), (PAD, PAD)),
        dimension_numbers=("NCHW", "OIHW", "NCHW"))
    ref = jnp.maximum(ref + bias.reshape(1, OUT_C, 1, 1), 0.0)
    assert y.shape == (N, OUT_C, H, W)
    assert jnp.allclose(y, ref, atol=2e-2, rtol=2e-2)

    print("KERNEL_OK")
</pallas_src>

<mosaic_0001>
module attributes {stable_mosaic.version = 11 : i64} {
  func.func @_conv_matmul_relu_kernel(%arg0: i32, %arg1: i32, %arg2: i32, %arg3: memref<512x36xbf16, #tpu.memory_space<vmem>>, %arg4: memref<36x128xbf16, #tpu.memory_space<vmem>>, %arg5: memref<1x128xf32, #tpu.memory_space<vmem>>, %arg6: memref<512x128xf32, #tpu.memory_space<vmem>>, %arg7: memref<512x128xf32, #tpu.memory_space<vmem>>) attributes {dimension_semantics = [#tpu.dimension_semantics<parallel>, #tpu.dimension_semantics<parallel>, #tpu.dimension_semantics<arbitrary>], iteration_bounds = array<i64: 1, 1, 1>, scalar_prefetch = 0 : i64, scratch_operands = 1 : i64, tpu.core_type = #tpu.core_type<tc>, window_params = [{transform_indices = @transform_0, window_bounds = array<i64: 512, 36>}, {transform_indices = @transform_1, window_bounds = array<i64: 36, 128>}, {transform_indices = @transform_2, window_bounds = array<i64: 1, 128>}, {transform_indices = @transform_3, window_bounds = array<i64: 512, 128>}]} {
    %c0_i32 = arith.constant 0 : i32
    %0 = arith.cmpi eq, %arg2, %c0_i32 : i32
    %1 = arith.extui %0 : i1 to i32
    %c0_i32_0 = arith.constant 0 : i32
    %2 = arith.cmpi ne, %1, %c0_i32_0 : i32
    scf.if %2 {
      %cst_10 = arith.constant 0.000000e+00 : f32
      %12 = vector.broadcast %cst_10 : f32 to vector<512x128xf32>
      %c0_11 = arith.constant 0 : index
      %c0_12 = arith.constant 0 : index
      %13 = vector.load %arg7[%c0_11, %c0_12] : memref<512x128xf32, #tpu.memory_space<vmem>>, vector<512x128xf32>
      tpu.vector_store %arg7[%c0_11, %c0_12], %12 {strides = array<i32>} : memref<512x128xf32, #tpu.memory_space<vmem>>, vector<512x128xf32>,
    } else {
    }
    %c0 = arith.constant 0 : index
    %c0_1 = arith.constant 0 : index
    %3 = vector.load %arg7[%c0, %c0_1] : memref<512x128xf32, #tpu.memory_space<vmem>>, vector<512x128xf32>
    %c0_2 = arith.constant 0 : index
    %c0_3 = arith.constant 0 : index
    %4 = vector.load %arg3[%c0_2, %c0_3] : memref<512x36xbf16, #tpu.memory_space<vmem>>, vector<512x36xbf16>
    %c0_4 = arith.constant 0 : index
    %c0_5 = arith.constant 0 : index
    %5 = vector.load %arg4[%c0_4, %c0_5] : memref<36x128xbf16, #tpu.memory_space<vmem>>, vector<36x128xbf16>
    %cst = arith.constant dense<0.000000e+00> : vector<512x128xf32>
    %6 = tpu.matmul %4, %5, %cst {dimension_numbers = #tpu.dot_dimension_numbers<[1], [0], [0], [1], [0, 0, 1, 1], [], []>} : vector<512x36xbf16>, vector<36x128xbf16>, vector<512x128xf32> -> vector<512x128xf32>
    %7 = arith.addf %3, %6 : vector<512x128xf32>
    %c0_6 = arith.constant 0 : index
    %c0_7 = arith.constant 0 : index
    %8 = vector.load %arg7[%c0_6, %c0_7] : memref<512x128xf32, #tpu.memory_space<vmem>>, vector<512x128xf32>
    tpu.vector_store %arg7[%c0_6, %c0_7], %7 {strides = array<i32>} : memref<512x128xf32, #tpu.memory_space<vmem>>, vector<512x128xf32>,
    %c0_i32_8 = arith.constant 0 : i32
    %9 = arith.cmpi eq, %arg2, %c0_i32_8 : i32
    %10 = arith.extui %9 : i1 to i32
    %c0_i32_9 = arith.constant 0 : i32
    %11 = arith.cmpi ne, %10, %c0_i32_9 : i32
    scf.if %11 {
      %c0_10 = arith.constant 0 : index
      %c0_11 = arith.constant 0 : index
      %12 = vector.load %arg7[%c0_10, %c0_11] : memref<512x128xf32, #tpu.memory_space<vmem>>, vector<512x128xf32>
      %c0_12 = arith.constant 0 : index
      %c0_13 = arith.constant 0 : index
      %13 = vector.load %arg5[%c0_12, %c0_13] : memref<1x128xf32, #tpu.memory_space<vmem>>, vector<1x128xf32>
      %14 = vector.broadcast %13 : vector<1x128xf32> to vector<512x128xf32>
      %15 = arith.addf %12, %14 : vector<512x128xf32>
      %cst_14 = arith.constant 0.000000e+00 : f32
      %16 = vector.broadcast %cst_14 : f32 to vector<512x128xf32>
      %17 = arith.maximumf %15, %16 : vector<512x128xf32>
      %c0_15 = arith.constant 0 : index
      %c0_16 = arith.constant 0 : index
      %18 = vector.load %arg6[%c0_15, %c0_16] : memref<512x128xf32, #tpu.memory_space<vmem>>, vector<512x128xf32>
      tpu.vector_store %arg6[%c0_15, %c0_16], %17 {strides = array<i32>} : memref<512x128xf32, #tpu.memory_space<vmem>>, vector<512x128xf32>,
    } else {
    }
    return
  }
  func.func @transform_0(%arg0: i32, %arg1: i32, %arg2: i32) -> (i32, i32) {
    %c0_i32 = arith.constant 0 : i32
    return %arg0, %arg2 : i32, i32
  }
  func.func @transform_1(%arg0: i32, %arg1: i32, %arg2: i32) -> (i32, i32) {
    %c0_i32 = arith.constant 0 : i32
    return %arg2, %arg1 : i32, i32
  }
  func.func @transform_2(%arg0: i32, %arg1: i32, %arg2: i32) -> (i32, i32) {
    %c0_i32 = arith.constant 0 : i32
    %c0_i32_0 = arith.constant 0 : i32
    return %c0_i32, %arg1 : i32, i32
  }
  func.func @transform_3(%arg0: i32, %arg1: i32, %arg2: i32) -> (i32, i32) {
    %c0_i32 = arith.constant 0 : i32
    return %arg0, %arg1 : i32, i32
  }
}

</mosaic_0001>

<bundles_post_ra>
// kernel: conv_relu.1
= control target key start
LH: loop header
LB: loop body
LE: loop exit
PB: predicated region body
PF: predicated region fallthrough
CT: control target
= control target key end

     0   :  { %vm488_vm0 = vcmask 1041408   ;;  %vm391_vm1 = vcmask 293888   ;;  %s1686_s1 = inlined_call_operand.vmem [shape: bf16[36,128], index: 1, kind: input, shape index: {}]   ;;  %s1687_s2 = inlined_call_operand.vmem [shape: f32[1,128], index: 2, kind: input, shape index: {}]   ;;  %s1688_s0 = inlined_call_operand.vmem [shape: bf16[512,36], index: 0, kind: input, shape index: {}]   ;;  %s1689_s3 = inlined_call_operand.vmem [shape: f32[512,128], index: 3, kind: output, shape index: {}]  }
   0x1   :  { %v215_v0 = vld [vmem:[%s1686_s1 + $0x10] sm:$0x3]  ;;  %v1257_v4 = vld [vmem:[%s1686_s1 + $0x8] sm:$0xff]  ;;  %v1256_v5 = vld [vmem:[%s1686_s1] sm:$0xff] }
   0x2   :  { %v385_v1 = vunpack.c.l.b16 %v215_v0  ;;  %v1224_v6 = vld [vmem:[%s1688_s0] sm:$0xff]  ;;  %v1225_v10 = vld [vmem:[%s1688_s0 + $0x8] sm:$0xff]  ;;  %v1226_v14 = vld [vmem:[%s1688_s0 + $0x10] sm:$0xff] }
   0x3   :  { %v1232_v7 = vld [vmem:[%s1688_s0 + $0x40] sm:$0xff]  ;;  %v1233_v11 = vld [vmem:[%s1688_s0 + $0x48] sm:$0xff]  ;;  %v1234_v15 = vld [vmem:[%s1688_s0 + $0x50] sm:$0xff] }
   0x4   :  { %v388_v2 = vpack.c.b16 %v385_v1, %v385_v1  ;;  %v1240_v8 = vld [vmem:[%s1688_s0 + $0x80] sm:$0xff]  ;;  %v1241_v12 = vld [vmem:[%s1688_s0 + $0x88] sm:$0xff]  ;;  %v1242_v16 = vld [vmem:[%s1688_s0 + $0x90] sm:$0xff] }
   0x5   :  { %v1248_v9 = vld [vmem:[%s1688_s0 + $0xc0] sm:$0xff]  ;;  %v1249_v13 = vld [vmem:[%s1688_s0 + $0xc8] sm:$0xff]  ;;  %v1250_v17 = vld [vmem:[%s1688_s0 + $0xd0] sm:$0xff] }
   0x6   :  { %v490_v3 = vsel %vm488_vm0, %v388_v2, 0  ;;  %v1227_v18 = vld [vmem:[%s1688_s0 + $0x18] sm:$0xff]  ;;  %v1228_v22 = vld [vmem:[%s1688_s0 + $0x20] sm:$0xff]  ;;  %v1229_v26 = vld [vmem:[%s1688_s0 + $0x28] sm:$0xff] }
   0x7   :  { %497 = vmatpush.bf16.msra.mxu0 %v490_v3  ;;  %1258 = vmatpush.bf16.msra.mxu1 %v490_v3  ;;  %v1235_v19 = vld [vmem:[%s1688_s0 + $0x58] sm:$0xff]  ;;  %v1236_v23 = vld [vmem:[%s1688_s0 + $0x60] sm:$0xff]  ;;  %v1237_v27 = vld [vmem:[%s1688_s0 + $0x68] sm:$0xff] }
   0x8   :  { %1259 = vmatpush.bf16.msra.mxu2 %v490_v3  ;;  %1260 = vmatpush.bf16.msra.mxu3 %v490_v3  ;;  %v1243_v20 = vld [vmem:[%s1688_s0 + $0x98] sm:$0xff]  ;;  %v1244_v24 = vld [vmem:[%s1688_s0 + $0xa0] sm:$0xff]  ;;  %v1245_v28 = vld [vmem:[%s1688_s0 + $0xa8] sm:$0xff] }
   0x9   :  { %v1251_v21 = vld [vmem:[%s1688_s0 + $0xd8] sm:$0xff]  ;;  %v1252_v25 = vld [vmem:[%s1688_s0 + $0xe0] sm:$0xff]  ;;  %v1253_v29 = vld [vmem:[%s1688_s0 + $0xe8] sm:$0xff] }
   0xa   :  { %v1230_v30 = vld [vmem:[%s1688_s0 + $0x30] sm:$0xff]  ;;  %v1231_v34 = vld [vmem:[%s1688_s0 + $0x38] sm:$0xff]  ;;  %v1428_v38 = vld [vmem:[%s1687_s2] ss:$0 sm:$0xff] }
   0xb   :  { %498 = vmatpush.bf16.msra.mxu0 %v1257_v4  ;;  %1261 = vmatpush.bf16.msra.mxu1 %v1257_v4  ;;  %v1238_v31 = vld [vmem:[%s1688_s0 + $0x70] sm:$0xff]  ;;  %v1239_v35 = vld [vmem:[%s1688_s0 + $0x78] sm:$0xff] }
   0xc   :  { %1262 = vmatpush.bf16.msra.mxu2 %v1257_v4  ;;  %1263 = vmatpush.bf16.msra.mxu3 %v1257_v4  ;;  %v1246_v32 = vld [vmem:[%s1688_s0 + $0xb0] sm:$0xff]  ;;  %v1247_v36 = vld [vmem:[%s1688_s0 + $0xb8] sm:$0xff] }
   0xd   :  { %v1254_v33 = vld [vmem:[%s1688_s0 + $0xf0] sm:$0xff]  ;;  %v1255_v37 = vld [vmem:[%s1688_s0 + $0xf8] sm:$0xff] }
   0xf   :  { %499 = vmatpush.bf16.msra.mxu0 %v1256_v5  ;;  %1264 = vmatpush.bf16.msra.mxu1 %v1256_v5 }
  0x10   :  { %1265 = vmatpush.bf16.msra.mxu2 %v1256_v5  ;;  %1266 = vmatpush.bf16.msra.mxu3 %v1256_v5 }
  0x12   :  { %1192 = vmatmul.msk.bf16.vlgmr.msra.gmra.mxu0 %vm391_vm1, %v1224_v6  ;;  %1200 = vmatmul.msk.bf16.vlgmr.msra.gmra.mxu1 %vm391_vm1, %v1232_v7 }
  0x13   :  { %1208 = vmatmul.msk.bf16.vlgmr.msra.gmra.mxu2 %vm391_vm1, %v1240_v8  ;;  %1216 = vmatmul.msk.bf16.vlgmr.msra.gmra.mxu3 %vm391_vm1, %v1248_v9 }
  0x22   :  { %1193 = vmatmul.msk.bf16.gmra.mxu0 %vm391_vm1, %v1225_v10  ;;  %1201 = vmatmul.msk.bf16.gmra.mxu1 %vm391_vm1, %v1233_v11 }
  0x23   :  { %1209 = vmatmul.msk.bf16.gmra.mxu2 %vm391_vm1, %v1241_v12  ;;  %1217 = vmatmul.msk.bf16.gmra.mxu3 %vm391_vm1, %v1249_v13 }
  0x32   :  { %1194 = vmatmul.msk.bf16.gmra.mxu0 %vm391_vm1, %v1226_v14  ;;  %1202 = vmatmul.msk.bf16.gmra.mxu1 %vm391_vm1, %v1234_v15 }
  0x33   :  { %1210 = vmatmul.msk.bf16.gmra.mxu2 %vm391_vm1, %v1242_v16  ;;  %1218 = vmatmul.msk.bf16.gmra.mxu3 %vm391_vm1, %v1250_v17 }
  0x42   :  { %1195 = vmatmul.msk.bf16.gmra.mxu0 %vm391_vm1, %v1227_v18  ;;  %1203 = vmatmul.msk.bf16.gmra.mxu1 %vm391_vm1, %v1235_v19 }
  0x43   :  { %1211 = vmatmul.msk.bf16.gmra.mxu2 %vm391_vm1, %v1243_v20  ;;  %1219 = vmatmul.msk.bf16.gmra.mxu3 %vm391_vm1, %v1251_v21 }
  0x52   :  { %1196 = vmatmul.msk.bf16.gmra.mxu0 %vm391_vm1, %v1228_v22  ;;  %1204 = vmatmul.msk.bf16.gmra.mxu1 %vm391_vm1, %v1236_v23 }
  0x53   :  { %1212 = vmatmul.msk.bf16.gmra.mxu2 %vm391_vm1, %v1244_v24  ;;  %1220 = vmatmul.msk.bf16.gmra.mxu3 %vm391_vm1, %v1252_v25 }
  0x62   :  { %1197 = vmatmul.msk.bf16.gmra.mxu0 %vm391_vm1, %v1229_v26  ;;  %1205 = vmatmul.msk.bf16.gmra.mxu1 %vm391_vm1, %v1237_v27 }
  0x63   :  { %1213 = vmatmul.msk.bf16.gmra.mxu2 %vm391_vm1, %v1245_v28  ;;  %1221 = vmatmul.msk.bf16.gmra.mxu3 %vm391_vm1, %v1253_v29 }
  0x72   :  { %1198 = vmatmul.msk.bf16.gmra.mxu0 %vm391_vm1, %v1230_v30  ;;  %1206 = vmatmul.msk.bf16.gmra.mxu1 %vm391_vm1, %v1238_v31 }
  0x73   :  { %1214 = vmatmul.msk.bf16.gmra.mxu2 %vm391_vm1, %v1246_v32  ;;  %1222 = vmatmul.msk.bf16.gmra.mxu3 %vm391_vm1, %v1254_v33 }
  0x82   :  { %1199 = vmatmul.msk.bf16.gmra.mxu0 %vm391_vm1, %v1231_v34  ;;  %1207 = vmatmul.msk.bf16.gmra.mxu1 %vm391_vm1, %v1239_v35 }
  0x83   :  { %1215 = vmatmul.msk.bf16.gmra.mxu2 %vm391_vm1, %v1247_v36  ;;  %1223 = vmatmul.msk.bf16.gmra.mxu3 %vm391_vm1, %v1255_v37 }
  0x8f   :  { %v501_v39 = vpop.f32.mrf.mxu0  ;;  %v541_v40 = vpop.f32.mrf.mxu1 }
  0x90   :  { %v860_v41 = vadd.f32 %v1428_v38, %v501_v39  ;;  %v876_v42 = vadd.f32 %v1428_v38, %v541_v40 }
  0x92   :  { %v924_v43 = vmax.f32 %v860_v41, 0.0  ;;  %v940_v44 = vmax.f32 %v876_v42, 0.0 }
  0x94   :  { %988 = vst [vmem:[%s1689_s3] sm:$0xff] %v924_v43 }
  0x95   :  { %1004 = vst [vmem:[%s1689_s3 + $0x80] sm:$0xff] %v940_v44 }
  0x96   :  { %v581_v45 = vpop.f32.mrf.mxu2  ;;  %v621_v46 = vpop.f32.mrf.mxu3 }
  0x97   :  { %v892_v47 = vadd.f32 %v1428_v38, %v581_v45  ;;  %v908_v48 = vadd.f32 %v1428_v38, %v621_v46  ;;  %v503_v49 = vpop.f32.mrf.mxu0  ;;  %v543_v50 = vpop.f32.mrf.mxu1 }
  0x98   :  { %v861_v51 = vadd.f32 %v1428_v38, %v503_v49  ;;  %v877_v52 = vadd.f32 %v1428_v38, %v543_v50 }
  0x99   :  { %v956_v53 = vmax.f32 %v892_v47, 0.0  ;;  %v972_v54 = vmax.f32 %v908_v48, 0.0 }
  0x9a   :  { %v925_v55 = vmax.f32 %v861_v51, 0.0  ;;  %v941_v56 = vmax.f32 %v877_v52, 0.0 }
  0x9b   :  { %1020 = vst [vmem:[%s1689_s3 + $0x100] sm:$0xff] %v956_v53 }
  0x9c   :  { %1036 = vst [vmem:[%s1689_s3 + $0x180] sm:$0xff] %v972_v54 }
  0x9d   :  { %989 = vst [vmem:[%s1689_s3 + $0x8] sm:$0xff] %v925_v55 }
  0x9e   :  { %1005 = vst [vmem:[%s1689_s3 + $0x88] sm:$0xff] %v941_v56  ;;  %v583_v57 = vpop.f32.mrf.mxu2  ;;  %v623_v58 = vpop.f32.mrf.mxu3 }
  0x9f   :  { %v893_v59 = vadd.f32 %v1428_v38, %v583_v57  ;;  %v909_v60 = vadd.f32 %v1428_v38, %v623_v58  ;;  %v506_v61 = vpop.f32.mrf.mxu0  ;;  %v546_v62 = vpop.f32.mrf.mxu1 }
  0xa0   :  { %v862_v63 = vadd.f32 %v1428_v38, %v506_v61  ;;  %v878_v0 = vadd.f32 %v1428_v38, %v546_v62 }
  0xa1   :  { %v957_v1 = vmax.f32 %v893_v59, 0.0  ;;  %v973_v2 = vmax.f32 %v909_v60, 0.0 }
  0xa2   :  { %v926_v3 = vmax.f32 %v862_v63, 0.0  ;;  %v942_v4 = vmax.f32 %v878_v0, 0.0 }
  0xa3   :  { %1021 = vst [vmem:[%s1689_s3 + $0x108] sm:$0xff] %v957_v1 }
  0xa4   :  { %1037 = vst [vmem:[%s1689_s3 + $0x188] sm:$0xff] %v973_v2 }
  0xa5   :  { %990 = vst [vmem:[%s1689_s3 + $0x10] sm:$0xff] %v926_v3 }
  0xa6   :  { %1006 = vst [vmem:[%s1689_s3 + $0x90] sm:$0xff] %v942_v4  ;;  %v586_v5 = vpop.f32.mrf.mxu2  ;;  %v626_v6 = vpop.f32.mrf.mxu3 }
  0xa7   :  { %v894_v7 = vadd.f32 %v1428_v38, %v586_v5  ;;  %v910_v8 = vadd.f32 %v1428_v38, %v626_v6  ;;  %v508_v9 = vpop.f32.mrf.mxu0  ;;  %v548_v10 = vpop.f32.mrf.mxu1 }
  0xa8   :  { %v863_v11 = vadd.f32 %v1428_v38, %v508_v9  ;;  %v879_v12 = vadd.f32 %v1428_v38, %v548_v10 }
  0xa9   :  { %v958_v13 = vmax.f32 %v894_v7, 0.0  ;;  %v974_v14 = vmax.f32 %v910_v8, 0.0 }
  0xaa   :  { %v927_v15 = vmax.f32 %v863_v11, 0.0  ;;  %v943_v16 = vmax.f32 %v879_v12, 0.0 }
  0xab   :  { %1022 = vst [vmem:[%s1689_s3 + $0x110] sm:$0xff] %v958_v13 }
  0xac   :  { %1038 = vst [vmem:[%s1689_s3 + $0x190] sm:$0xff] %v974_v14 }
  0xad   :  { %991 = vst [vmem:[%s1689_s3 + $0x18] sm:$0xff] %v927_v15 }
  0xae   :  { %1007 = vst [vmem:[%s1689_s3 + $0x98] sm:$0xff] %v943_v16  ;;  %v588_v17 = vpop.f32.mrf.mxu2  ;;  %v628_v18 = vpop.f32.mrf.mxu3 }
  0xaf   :  { %v895_v19 = vadd.f32 %v1428_v38, %v588_v17  ;;  %v911_v20 = vadd.f32 %v1428_v38, %v628_v18  ;;  %v511_v21 = vpop.f32.mrf.mxu0  ;;  %v551_v22 = vpop.f32.mrf.mxu1 }
  0xb0   :  { %v864_v23 = vadd.f32 %v1428_v38, %v511_v21  ;;  %v880_v24 = vadd.f32 %v1428_v38, %v551_v22 }
  0xb1   :  { %v959_v25 = vmax.f32 %v895_v19, 0.0  ;;  %v975_v26 = vmax.f32 %v911_v20, 0.0 }
  0xb2   :  { %v928_v27 = vmax.f32 %v864_v23, 0.0  ;;  %v944_v28 = vmax.f32 %v880_v24, 0.0 }
  0xb3   :  { %1023 = vst [vmem:[%s1689_s3 + $0x118] sm:$0xff] %v959_v25 }
  0xb4   :  { %1039 = vst [vmem:[%s1689_s3 + $0x198] sm:$0xff] %v975_v26 }
  0xb5   :  { %992 = vst [vmem:[%s1689_s3 + $0x20] sm:$0xff] %v928_v27 }
  0xb6   :  { %1008 = vst [vmem:[%s1689_s3 + $0xa0] sm:$0xff] %v944_v28  ;;  %v591_v29 = vpop.f32.mrf.mxu2  ;;  %v631_v30 = vpop.f32.mrf.mxu3 }
  0xb7   :  { %v896_v31 = vadd.f32 %v1428_v38, %v591_v29  ;;  %v912_v32 = vadd.f32 %v1428_v38, %v631_v30  ;;  %v513_v33 = vpop.f32.mrf.mxu0  ;;  %v553_v34 = vpop.f32.mrf.mxu1 }
  0xb8   :  { %v865_v35 = vadd.f32 %v1428_v38, %v513_v33  ;;  %v881_v36 = vadd.f32 %v1428_v38, %v553_v34 }
  0xb9   :  { %v960_v37 = vmax.f32 %v896_v31, 0.0  ;;  %v976_v39 = vmax.f32 %v912_v32, 0.0 }
  0xba   :  { %v929_v40 = vmax.f32 %v865_v35, 0.0  ;;  %v945_v41 = vmax.f32 %v881_v36, 0.0 }
  0xbb   :  { %1024 = vst [vmem:[%s1689_s3 + $0x120] sm:$0xff] %v960_v37 }
  0xbc   :  { %1040 = vst [vmem:[%s1689_s3 + $0x1a0] sm:$0xff] %v976_v39 }
  0xbd   :  { %993 = vst [vmem:[%s1689_s3 + $0x28] sm:$0xff] %v929_v40 }
  0xbe   :  { %1009 = vst [vmem:[%s1689_s3 + $0xa8] sm:$0xff] %v945_v41  ;;  %v593_v42 = vpop.f32.mrf.mxu2  ;;  %v633_v43 = vpop.f32.mrf.mxu3 }
  0xbf   :  { %v897_v44 = vadd.f32 %v1428_v38, %v593_v42  ;;  %v913_v45 = vadd.f32 %v1428_v38, %v633_v43  ;;  %v516_v46 = vpop.f32.mrf.mxu0  ;;  %v556_v47 = vpop.f32.mrf.mxu1 }
  0xc0   :  { %v866_v48 = vadd.f32 %v1428_v38, %v516_v46  ;;  %v882_v49 = vadd.f32 %v1428_v38, %v556_v47 }
  0xc1   :  { %v961_v50 = vmax.f32 %v897_v44, 0.0  ;;  %v977_v51 = vmax.f32 %v913_v45, 0.0 }
  0xc2   :  { %v930_v52 = vmax.f32 %v866_v48, 0.0  ;;  %v946_v53 = vmax.f32 %v882_v49, 0.0 }
  0xc3   :  { %1025 = vst [vmem:[%s1689_s3 + $0x128] sm:$0xff] %v961_v50 }
  0xc4   :  { %1041 = vst [vmem:[%s1689_s3 + $0x1a8] sm:$0xff] %v977_v51 }
  0xc5   :  { %994 = vst [vmem:[%s1689_s3 + $0x30] sm:$0xff] %v930_v52 }
  0xc6   :  { %1010 = vst [vmem:[%s1689_s3 + $0xb0] sm:$0xff] %v946_v53  ;;  %v596_v54 = vpop.f32.mrf.mxu2  ;;  %v636_v55 = vpop.f32.mrf.mxu3 }
  0xc7   :  { %v898_v56 = vadd.f32 %v1428_v38, %v596_v54  ;;  %v914_v57 = vadd.f32 %v1428_v38, %v636_v55  ;;  %v518_v58 = vpop.f32.mrf.mxu0  ;;  %v558_v59 = vpop.f32.mrf.mxu1 }
  0xc8   :  { %v867_v60 = vadd.f32 %v1428_v38, %v518_v58  ;;  %v883_v61 = vadd.f32 %v1428_v38, %v558_v59 }
  0xc9   :  { %v962_v62 = vmax.f32 %v898_v56, 0.0  ;;  %v978_v63 = vmax.f32 %v914_v57, 0.0 }
  0xca   :  { %v931_v0 = vmax.f32 %v867_v60, 0.0  ;;  %v947_v1 = vmax.f32 %v883_v61, 0.0 }
  0xcb   :  { %1026 = vst [vmem:[%s1689_s3 + $0x130] sm:$0xff] %v962_v62 }
  0xcc   :  { %1042 = vst [vmem:[%s1689_s3 + $0x1b0] sm:$0xff] %v978_v63 }
  0xcd   :  { %995 = vst [vmem:[%s1689_s3 + $0x38] sm:$0xff] %v931_v0 }
  0xce   :  { %1011 = vst [vmem:[%s1689_s3 + $0xb8] sm:$0xff] %v947_v1  ;;  %v598_v2 = vpop.f32.mrf.mxu2  ;;  %v638_v3 = vpop.f32.mrf.mxu3 }
  0xcf   :  { %v899_v4 = vadd.f32 %v1428_v38, %v598_v2  ;;  %v915_v5 = vadd.f32 %v1428_v38, %v638_v3  ;;  %v521_v6 = vpop.f32.mrf.mxu0  ;;  %v561_v7 = vpop.f32.mrf.mxu1 }
  0xd0   :  { %v868_v8 = vadd.f32 %v1428_v38, %v521_v6  ;;  %v884_v9 = vadd.f32 %v1428_v38, %v561_v7 }
  0xd1   :  { %v963_v10 = vmax.f32 %v899_v4, 0.0  ;;  %v979_v11 = vmax.f32 %v915_v5, 0.0 }
  0xd2   :  { %v932_v12 = vmax.f32 %v868_v8, 0.0  ;;  %v948_v13 = vmax.f32 %v884_v9, 0.0 }
  0xd3   :  { %1027 = vst [vmem:[%s1689_s3 + $0x138] sm:$0xff] %v963_v10 }
  0xd4   :  { %1043 = vst [vmem:[%s1689_s3 + $0x1b8] sm:$0xff] %v979_v11 }
  0xd5   :  { %996 = vst [vmem:[%s1689_s3 + $0x40] sm:$0xff] %v932_v12 }
  0xd6   :  { %1012 = vst [vmem:[%s1689_s3 + $0xc0] sm:$0xff] %v948_v13  ;;  %v601_v14 = vpop.f32.mrf.mxu2  ;;  %v641_v15 = vpop.f32.mrf.mxu3 }
  0xd7   :  { %v900_v16 = vadd.f32 %v1428_v38, %v601_v14  ;;  %v916_v17 = vadd.f32 %v1428_v38, %v641_v15  ;;  %v523_v18 = vpop.f32.mrf.mxu0  ;;  %v563_v19 = vpop.f32.mrf.mxu1 }
  0xd8   :  { %v869_v20 = vadd.f32 %v1428_v38, %v523_v18  ;;  %v885_v21 = vadd.f32 %v1428_v38, %v563_v19 }
  0xd9   :  { %v964_v22 = vmax.f32 %v900_v16, 0.0  ;;  %v980_v23 = vmax.f32 %v916_v17, 0.0 }
  0xda   :  { %v933_v24 = vmax.f32 %v869_v20, 0.0  ;;  %v949_v25 = vmax.f32 %v885_v21, 0.0 }
  0xdb   :  { %1028 = vst [vmem:[%s1689_s3 + $0x140] sm:$0xff] %v964_v22 }
  0xdc   :  { %1044 = vst [vmem:[%s1689_s3 + $0x1c0] sm:$0xff] %v980_v23 }
  0xdd   :  { %997 = vst [vmem:[%s1689_s3 + $0x48] sm:$0xff] %v933_v24 }
  0xde   :  { %1013 = vst [vmem:[%s1689_s3 + $0xc8] sm:$0xff] %v949_v25  ;;  %v603_v26 = vpop.f32.mrf.mxu2  ;;  %v643_v27 = vpop.f32.mrf.mxu3 }
  0xdf   :  { %v901_v28 = vadd.f32 %v1428_v38, %v603_v26  ;;  %v917_v29 = vadd.f32 %v1428_v38, %v643_v27  ;;  %v526_v30 = vpop.f32.mrf.mxu0  ;;  %v566_v31 = vpop.f32.mrf.mxu1 }
  0xe0   :  { %v870_v32 = vadd.f32 %v1428_v38, %v526_v30  ;;  %v886_v33 = vadd.f32 %v1428_v38, %v566_v31 }
  0xe1   :  { %v965_v34 = vmax.f32 %v901_v28, 0.0  ;;  %v981_v35 = vmax.f32 %v917_v29, 0.0 }
  0xe2   :  { %v934_v36 = vmax.f32 %v870_v32, 0.0  ;;  %v950_v37 = vmax.f32 %v886_v33, 0.0 }
  0xe3   :  { %1029 = vst [vmem:[%s1689_s3 + $0x148] sm:$0xff] %v965_v34 }
  0xe4   :  { %1045 = vst [vmem:[%s1689_s3 + $0x1c8] sm:$0xff] %v981_v35 }
  0xe5   :  { %998 = vst [vmem:[%s1689_s3 + $0x50] sm:$0xff] %v934_v36 }
  0xe6   :  { %1014 = vst [vmem:[%s1689_s3 + $0xd0] sm:$0xff] %v950_v37  ;;  %v606_v39 = vpop.f32.mrf.mxu2  ;;  %v646_v40 = vpop.f32.mrf.mxu3 }
  0xe7   :  { %v902_v41 = vadd.f32 %v1428_v38, %v606_v39  ;;  %v918_v42 = vadd.f32 %v1428_v38, %v646_v40  ;;  %v528_v43 = vpop.f32.mrf.mxu0  ;;  %v568_v44 = vpop.f32.mrf.mxu1 }
  0xe8   :  { %v871_v45 = vadd.f32 %v1428_v38, %v528_v43  ;;  %v887_v46 = vadd.f32 %v1428_v38, %v568_v44 }
  0xe9   :  { %v966_v47 = vmax.f32 %v902_v41, 0.0  ;;  %v982_v48 = vmax.f32 %v918_v42, 0.0 }
  0xea   :  { %v935_v49 = vmax.f32 %v871_v45, 0.0  ;;  %v951_v50 = vmax.f32 %v887_v46, 0.0 }
  0xeb   :  { %1030 = vst [vmem:[%s1689_s3 + $0x150] sm:$0xff] %v966_v47 }
  0xec   :  { %1046 = vst [vmem:[%s1689_s3 + $0x1d0] sm:$0xff] %v982_v48 }
  0xed   :  { %999 = vst [vmem:[%s1689_s3 + $0x58] sm:$0xff] %v935_v49 }
  0xee   :  { %1015 = vst [vmem:[%s1689_s3 + $0xd8] sm:$0xff] %v951_v50  ;;  %v608_v51 = vpop.f32.mrf.mxu2  ;;  %v648_v52 = vpop.f32.mrf.mxu3 }
  0xef   :  { %v903_v53 = vadd.f32 %v1428_v38, %v608_v51  ;;  %v919_v54 = vadd.f32 %v1428_v38, %v648_v52  ;;  %v531_v55 = vpop.f32.mrf.mxu0  ;;  %v571_v56 = vpop.f32.mrf.mxu1 }
  0xf0   :  { %v872_v57 = vadd.f32 %v1428_v38, %v531_v55  ;;  %v888_v58 = vadd.f32 %v1428_v38, %v571_v56 }
  0xf1   :  { %v967_v59 = vmax.f32 %v903_v53, 0.0  ;;  %v983_v60 = vmax.f32 %v919_v54, 0.0 }
  0xf2   :  { %v936_v61 = vmax.f32 %v872_v57, 0.0  ;;  %v952_v62 = vmax.f32 %v888_v58, 0.0 }
  0xf3   :  { %1031 = vst [vmem:[%s1689_s3 + $0x158] sm:$0xff] %v967_v59 }
  0xf4   :  { %1047 = vst [vmem:[%s1689_s3 + $0x1d8] sm:$0xff] %v983_v60 }
  0xf5   :  { %1000 = vst [vmem:[%s1689_s3 + $0x60] sm:$0xff] %v936_v61 }
  0xf6   :  { %1016 = vst [vmem:[%s1689_s3 + $0xe0] sm:$0xff] %v952_v62  ;;  %v611_v63 = vpop.f32.mrf.mxu2  ;;  %v651_v0 = vpop.f32.mrf.mxu3 }
  0xf7   :  { %v904_v1 = vadd.f32 %v1428_v38, %v611_v63  ;;  %v920_v2 = vadd.f32 %v1428_v38, %v651_v0  ;;  %v533_v3 = vpop.f32.mrf.mxu0  ;;  %v573_v4 = vpop.f32.mrf.mxu1 }
  0xf8   :  { %v873_v5 = vadd.f32 %v1428_v38, %v533_v3  ;;  %v889_v6 = vadd.f32 %v1428_v38, %v573_v4 }
  0xf9   :  { %v968_v7 = vmax.f32 %v904_v1, 0.0  ;;  %v984_v8 = vmax.f32 %v920_v2, 0.0 }
  0xfa   :  { %v937_v9 = vmax.f32 %v873_v5, 0.0  ;;  %v953_v10 = vmax.f32 %v889_v6, 0.0 }
  0xfb   :  { %1032 = vst [vmem:[%s1689_s3 + $0x160] sm:$0xff] %v968_v7 }
  0xfc   :  { %1048 = vst [vmem:[%s1689_s3 + $0x1e0] sm:$0xff] %v984_v8 }
  0xfd   :  { %1001 = vst [vmem:[%s1689_s3 + $0x68] sm:$0xff] %v937_v9 }
  0xfe   :  { %1017 = vst [vmem:[%s1689_s3 + $0xe8] sm:$0xff] %v953_v10  ;;  %v613_v11 = vpop.f32.mrf.mxu2  ;;  %v653_v12 = vpop.f32.mrf.mxu3 }
  0xff   :  { %v905_v13 = vadd.f32 %v1428_v38, %v613_v11  ;;  %v921_v14 = vadd.f32 %v1428_v38, %v653_v12  ;;  %v536_v15 = vpop.f32.mrf.mxu0  ;;  %v576_v16 = vpop.f32.mrf.mxu1 }
 0x100   :  { %v874_v17 = vadd.f32 %v1428_v38, %v536_v15  ;;  %v890_v18 = vadd.f32 %v1428_v38, %v576_v16 }
 0x101   :  { %v969_v19 = vmax.f32 %v905_v13, 0.0  ;;  %v985_v20 = vmax.f32 %v921_v14, 0.0 }
 0x102   :  { %v938_v21 = vmax.f32 %v874_v17, 0.0  ;;  %v954_v22 = vmax.f32 %v890_v18, 0.0 }
 0x103   :  { %1033 = vst [vmem:[%s1689_s3 + $0x168] sm:$0xff] %v969_v19 }
 0x104   :  { %1049 = vst [vmem:[%s1689_s3 + $0x1e8] sm:$0xff] %v985_v20 }
 0x105   :  { %1002 = vst [vmem:[%s1689_s3 + $0x70] sm:$0xff] %v938_v21 }
 0x106   :  { %1018 = vst [vmem:[%s1689_s3 + $0xf0] sm:$0xff] %v954_v22  ;;  %v616_v23 = vpop.f32.mrf.mxu2  ;;  %v656_v24 = vpop.f32.mrf.mxu3 }
 0x107   :  { %v906_v25 = vadd.f32 %v1428_v38, %v616_v23  ;;  %v922_v26 = vadd.f32 %v1428_v38, %v656_v24  ;;  %v538_v27 = vpop.f32.mrf.mxu0  ;;  %v578_v28 = vpop.f32.mrf.mxu1 }
 0x108   :  { %v875_v29 = vadd.f32 %v1428_v38, %v538_v27  ;;  %v891_v30 = vadd.f32 %v1428_v38, %v578_v28 }
 0x109   :  { %v970_v31 = vmax.f32 %v906_v25, 0.0  ;;  %v986_v32 = vmax.f32 %v922_v26, 0.0 }
 0x10a   :  { %v939_v33 = vmax.f32 %v875_v29, 0.0  ;;  %v955_v34 = vmax.f32 %v891_v30, 0.0 }
 0x10b   :  { %1034 = vst [vmem:[%s1689_s3 + $0x170] sm:$0xff] %v970_v31 }
 0x10c   :  { %1050 = vst [vmem:[%s1689_s3 + $0x1f0] sm:$0xff] %v986_v32 }
 0x10d   :  { %1003 = vst [vmem:[%s1689_s3 + $0x78] sm:$0xff] %v939_v33 }
 0x10e   :  { %1019 = vst [vmem:[%s1689_s3 + $0xf8] sm:$0xff] %v955_v34  ;;  %v618_v35 = vpop.f32.mrf.mxu2  ;;  %v658_v36 = vpop.f32.mrf.mxu3 }
 0x10f   :  { %v907_v37 = vadd.f32 %v1428_v38, %v618_v35  ;;  %v923_v39 = vadd.f32 %v1428_v38, %v658_v36 }
 0x111   :  { %v971_v40 = vmax.f32 %v907_v37, 0.0  ;;  %v987_v41 = vmax.f32 %v923_v39, 0.0 }
 0x113   :  { %1035 = vst [vmem:[%s1689_s3 + $0x178] sm:$0xff] %v971_v40 }
 0x114   :  { %1051 = vst [vmem:[%s1689_s3 + $0x1f8] sm:$0xff] %v987_v41 }

</bundles_post_ra>
